<compile_context>
chip_gen: v5e
topology: v5e:2x2
jax: 0.10.0
libtpu: 0.0.40
codegen_flags: <defaults>
</compile_context>

<pallas_src>
import jax
import jax.numpy as jnp
from jax import lax
from jax.experimental import pallas as pl
from jax.experimental.pallas import tpu as pltpu


def _prior_kernel(x_ref, w_ref, o_ref):
    # x_ref: (C, HW)   w_ref: (Q, C)   o_ref: (Q, C)
    x = x_ref[...]                                             # [C, HW]
    # 1x1 conv over channels: [Q, C] @ [C, HW] -> [Q, HW]  (MXU, natural form).
    # The per-query conv bias is omitted: it is constant along HW, so the
    # row-softmax below is exactly invariant to it.
    logits = jnp.dot(w_ref[...], x, preferred_element_type=jnp.float32)
    # softmax over the spatial (lane) axis, independently per query
    m = jnp.max(logits, axis=-1, keepdims=True)                # [Q, 1]  XLU
    p = jnp.exp(logits - m)                                    # [Q, HW] EUP/VPU
    s = jnp.sum(p, axis=-1, keepdims=True)                     # [Q, 1]  XLU
    attn = p * pl.reciprocal(s, approx=True)                   # EUP vrcp
    # weighted pooling: contract the lane (HW) axis of both operands -> [Q, C]
    prior = lax.dot_general(attn, x, (((1,), (1,)), ((), ())),
                            preferred_element_type=jnp.float32)
    # (Q, C) = (8, 32) is a single-vreg store; a lane-dense [1, Q*C] slab
    # rewrite only pays off at production Q*C (needs a sublane->lane relayout).
    o_ref[...] = prior.astype(o_ref.dtype)


def query_module_forward(x_nchw, w_qc, b_q):
    """x_nchw: [B, C, H, W] (PyTorch NCHW).
    w_qc:   [Q, C]  (PyTorch 1x1 Conv2d weight [Q, C, 1, 1] squeezed).
    b_q:    [Q]     (unused: softmax over the spatial axis cancels it exactly).
    Returns the object prior, shape [B, Q, C]."""
    del b_q  # exactly cancelled by the spatial softmax
    B, C, H, W = x_nchw.shape
    Q = w_qc.shape[0]
    HW = H * W
    # No transpose: keep channels on sublanes, spatial (HW) on lanes.
    x_flat = x_nchw.reshape(B, C, HW)                          # [B, C, HW]

    return pl.pallas_call(
        _prior_kernel,
        out_shape=jax.ShapeDtypeStruct((B, Q, C), x_nchw.dtype),
        grid=(B,),
        in_specs=[
            pl.BlockSpec((None, C, HW), lambda i: (i, 0, 0)),  # batch squeezed
            pl.BlockSpec((Q, C), lambda i: (0, 0)),
        ],
        out_specs=pl.BlockSpec((None, Q, C), lambda i: (i, 0, 0)),
        compiler_params=pltpu.CompilerParams(
            dimension_semantics=("parallel",)),
    )(x_flat, w_qc)


def _reference(x_nchw, w_qc, b_q):
    B, C, H, W = x_nchw.shape
    x_flat = x_nchw.reshape(B, C, H * W)                       # [B, C, HW]
    logits = jnp.einsum('qc,bcn->bqn', w_qc, x_flat) + b_q[None, :, None]
    attn = jax.nn.softmax(logits, axis=-1)                     # [B, Q, HW]
    return jnp.einsum('bqn,bcn->bqc', attn, x_flat)            # [B, Q, C]


if __name__ == "__main__":
    # small shapes consistent with the module:
    #   batch=2, num_features(C)=32, spatial 16x16 (HW=256), num_queries(Q)=8
    B, C, H, W, Q = 2, 32, 16, 16, 8

    key = jax.random.PRNGKey(0)
    kx, kw, kb = jax.random.split(key, 3)
    x = jax.random.normal(kx, (B, C, H, W), dtype=jnp.float32)
    # deterministic synthetic params for the PriorModule's 1x1 conv (C -> Q)
    w = jax.random.normal(kw, (Q, C), dtype=jnp.float32) * 0.1
    b = jax.random.normal(kb, (Q,), dtype=jnp.float32) * 0.1

    out = query_module_forward(x, w, b)
    out = jax.block_until_ready(out)

    ref = _reference(x, w, b)   # reference keeps the bias -> proves invariance
    assert out.shape == (B, Q, C)
    # tolerance relaxed slightly for pl.reciprocal(approx=True) in the softmax
    assert jnp.allclose(out, ref, atol=5e-3, rtol=5e-3), "mismatch vs reference"

    print("KERNEL_OK")
</pallas_src>

<mosaic_0001>
module attributes {stable_mosaic.version = 11 : i64} {
  func.func @_prior_kernel(%arg0: i32, %arg1: memref<1x32x256xf32, #tpu.memory_space<vmem>>, %arg2: memref<8x32xf32, #tpu.memory_space<vmem>>, %arg3: memref<1x8x32xf32, #tpu.memory_space<vmem>>) attributes {dimension_semantics = [#tpu.dimension_semantics<parallel>], iteration_bounds = array<i64: 2>, scalar_prefetch = 0 : i64, scratch_operands = 0 : i64, tpu.core_type = #tpu.core_type<tc>, window_params = [{transform_indices = @transform_0, window_bounds = array<i64: 1, 32, 256>}, {pipeline_mode = #tpu.pipeline_mode<synchronous>, transform_indices = @transform_1, window_bounds = array<i64: 8, 32>}, {transform_indices = @transform_2, window_bounds = array<i64: 1, 8, 32>}]} {
    %c0 = arith.constant 0 : index
    %c0_0 = arith.constant 0 : index
    %c0_1 = arith.constant 0 : index
    %0 = vector.load %arg1[%c0, %c0_0, %c0_1] : memref<1x32x256xf32, #tpu.memory_space<vmem>>, vector<1x32x256xf32>
    %1 = vector.shape_cast %0 : vector<1x32x256xf32> to vector<32x256xf32>
    %c0_2 = arith.constant 0 : index
    %c0_3 = arith.constant 0 : index
    %2 = vector.load %arg2[%c0_2, %c0_3] : memref<8x32xf32, #tpu.memory_space<vmem>>, vector<8x32xf32>
    %cst = arith.constant dense<0.000000e+00> : vector<8x256xf32>
    %3 = tpu.matmul %2, %1, %cst {dimension_numbers = #tpu.dot_dimension_numbers<[1], [0], [0], [1], [0, 0, 1, 1], [], []>} : vector<8x32xf32>, vector<32x256xf32>, vector<8x256xf32> -> vector<8x256xf32>
    %cst_4 = arith.constant dense<0xFF800000> : vector<8xf32>
    %4 = vector.multi_reduction <maximumf>, %3, %cst_4 [1] : vector<8x256xf32> to vector<8xf32>
    %5 = vector.shape_cast %4 : vector<8xf32> to vector<8x1xf32>
    %6 = vector.broadcast %5 : vector<8x1xf32> to vector<8x256xf32>
    %7 = arith.subf %3, %6 : vector<8x256xf32>
    %8 = math.exp %7 : vector<8x256xf32>
    %cst_5 = arith.constant dense<0.000000e+00> : vector<8xf32>
    %9 = vector.multi_reduction <add>, %8, %cst_5 [1] : vector<8x256xf32> to vector<8xf32>
    %10 = vector.shape_cast %9 : vector<8xf32> to vector<8x1xf32>
    %11 = tpu.reciprocal %10 {approx = true} : vector<8x1xf32> -> vector<8x1xf32>
    %12 = vector.broadcast %11 : vector<8x1xf32> to vector<8x256xf32>
    %13 = arith.mulf %8, %12 : vector<8x256xf32>
    %cst_6 = arith.constant dense<0.000000e+00> : vector<8x32xf32>
    %14 = tpu.matmul %13, %1, %cst_6 {dimension_numbers = #tpu.dot_dimension_numbers<[1], [1], [0], [0], [0, 0, 1, 0], [], []>} : vector<8x256xf32>, vector<32x256xf32>, vector<8x32xf32> -> vector<8x32xf32>
    %c0_7 = arith.constant 0 : index
    %c0_8 = arith.constant 0 : index
    %c0_9 = arith.constant 0 : index
    %15 = vector.load %arg3[%c0_7, %c0_8, %c0_9] : memref<1x8x32xf32, #tpu.memory_space<vmem>>, vector<1x8x32xf32>
    %16 = vector.shape_cast %15 : vector<1x8x32xf32> to vector<8x32xf32>
    %17 = vector.shape_cast %14 : vector<8x32xf32> to vector<1x8x32xf32>
    tpu.vector_store %arg3[%c0_7, %c0_8, %c0_9], %17 {strides = array<i32>} : memref<1x8x32xf32, #tpu.memory_space<vmem>>, vector<1x8x32xf32>,
    return
  }
  func.func @transform_0(%arg0: i32) -> (i32, i32, i32) {
    %c0_i32 = arith.constant 0 : i32
    %c0_i32_0 = arith.constant 0 : i32
    %c0_i32_1 = arith.constant 0 : i32
    return %arg0, %c0_i32, %c0_i32_0 : i32, i32, i32
  }
  func.func @transform_1(%arg0: i32) -> (i32, i32) {
    %c0_i32 = arith.constant 0 : i32
    %c0_i32_0 = arith.constant 0 : i32
    %c0_i32_1 = arith.constant 0 : i32
    return %c0_i32, %c0_i32_0 : i32, i32
  }
  func.func @transform_2(%arg0: i32) -> (i32, i32, i32) {
    %c0_i32 = arith.constant 0 : i32
    %c0_i32_0 = arith.constant 0 : i32
    %c0_i32_1 = arith.constant 0 : i32
    return %arg0, %c0_i32, %c0_i32_0 : i32, i32, i32
  }
}

</mosaic_0001>

<bundles_post_ra>
// kernel: tpu_custom_call.1
= control target key start
LH: loop header
LB: loop body
LE: loop exit
PB: predicated region body
PF: predicated region fallthrough
CT: control target
= control target key end

     0   :  { %7 = vsyncpa [#allocation3], 0  ;;  %s763_s0 = inlined_call_operand.hbm [shape: f32[2,32,256], index: 0, kind: input, shape index: {}]   ;;  %s764_s1 = inlined_call_operand.hbm [shape: f32[8,32], index: 1, kind: input, shape index: {}]   ;;  %s765_s2 = inlined_call_operand.hbm [shape: f32[2,8,32], index: 2, kind: output, shape index: {}]  }
   0x1   :  { %9 = vsyncpa [#allocation3 + $0x1], 0 }
   0x2   :  { %10 = vsyncpa [#allocation6], 0 }
   0x3   :  { %11 = vsyncpa [#allocation4], 0 }
   0x4   :  { %13 = vsyncpa [#allocation4 + $0x1], 0  ;;  %s617_s9 = smov 0   ;;  %s619_s10 = smov 0  }
   0x5   :  { %s621_s11 = smov 0   ;;  %s623_s12 = smov 0  }
   0x6 LB: > { %s638_s13 = sadd.s32 4294967295, %s597_s12   ;;  %s384_s14 = sadd.s32 4294967294, %s597_s12   ;;  %s597_s12 = sphi %s623_s12, %s776_s12   ;;  %s593_s11 = sphi %s621_s11, %s775_s11   ;;  %s589_s10 = sphi %s619_s10, %s774_s10   ;;  %s585_s9 = sphi %s617_s9, %s773_s9  }
   0x7   : > { %s642_s15 = sadd.s32 1, %s597_s12   ;;  %s26_s16 = sadd.s32 1, %s593_s11 }
   0x8   : > { %s23_s17 = ssub.s32 %s597_s12, %s642_s15  ;;  %p33_p0 = scmp.ne.s32.totalorder %s593_s11, %s589_s10 }
   0x9   : > { %p24_p1 = scmp.eq.s32.totalorder %s23_s17, 0  ;;  %p34_p2 = scmp.eq.s32.totalorder %s597_s12, 0 }
   0xa   : > { %p39_p3 = scmp.ne.s32.totalorder %s589_s10, %s585_s9  ;;  %p40_p4 = scmp.eq.s32.totalorder %s638_s13, 0 }
   0xb   : > { %s654_s18 = scalar_select %p24_p1, %s593_s11, %s26_s16  }
   0xc   : > { %p656_p5 = por %p34_p2, %p33_p0  ;;  %p662_p6 = por %p40_p4, %p39_p3 }
   0xd   : > { %p84_p7 = scmp.eq.s32.totalorder %s638_s13, 1  ;;  %p90_p8 = scmp.eq.s32.totalorder %s384_s14, 1 }
   0xe   : > { %p385_p9 = scmp.ge.s32.totalorder %s597_s12, 1  ;;  %p97_p10 = scmp.lt.s32.totalorder %s597_s12, 3 }
   0xf   : > { %p669_p11 = por %p84_p7, %p33_p0  ;;  %p673_p12 = por %p90_p8, %p39_p3 }
  0x10   : > { %p677_p13 = pnand %p385_p9, %p97_p10  ;;  %s109_s26 = sshll.u32 %s764_s1, 4  ;;  %s110_s26 = int_to_ptr.hbm [resolvable:$true] %s109_s26 }
  0x11   : > { %s599_s27 = smov [#allocation5]   ;;  %p423_p3 = scmp.lt.s32.totalorder %s597_s12, 2 }
  0x12   : > { %p410_p1 = pneg %p677_p13  ;;  %s111_s28 = sshll.u32 %s599_s27, 4  ;;  %s112_s28 = int_to_ptr.vmem [resolvable:$true] %s111_s28 }
  0x13   : > { %s122_s29 = sand.u32 1, %s593_s11   ;;  %p693_p7 = pnand %p423_p3, %p656_p5 }
  0x14   : > { %p411_p2 = pnand %p410_p1, %p40_p4  ;;  %s388_s3 = sshll.u32 %s122_s29, 6 }
  0x15   : > { %s401_s4 = sshll.u32 %s597_s12, 6  ;;  %s126_s14 = scalar_lea.vmem [#allocation2], %s388_s3 }
  0x16   : > { %413 = dma.hbm_to_vmem [thread:$0]  (!%p411_p2), %s110_s26, 128, %s112_s28, [#allocation6]  }
  0x17   : > { %s131_s7 = scalar_lea.hbm %s763_s0, %s401_s4  ;;  %s134_s16 = sshll.u32 %s126_s14, 4  ;;  %s135_s16 = int_to_ptr.vmem [resolvable:$true] %s134_s16 }
  0x18   : > { %s132_s8 = sshll.u32 %s131_s7, 4  ;;  %s123_s17 = scalar_lea.sflag [#allocation3], %s122_s29  ;;  %s133_s8 = int_to_ptr.hbm [resolvable:$true] %s132_s8 }
  0x19   : > { %s497_s24 = sshra.s32 %s133_s8, 4  ;;  %p501_p8 = pneg %p693_p7  ;;  %s498_s24 = int_to_ptr.hbm [resolvable:$true] %s497_s24 }
  0x1a   : > { %s499_s19 = scalar_lea.hbm %s498_s24, 64  ;;  %s504_s27 = scalar_lea.hbm %s763_s0, 128 }
  0x1b   : > { %p500_p5 = scmp.ne.s32.totalorder %s498_s24, %s499_s19  ;;  %p505_p1 = scmp.lt.s32.totalorder %s498_s24, %s763_s0 }
  0x1c   : > { %p506_p2 = scmp.lt.s32.totalorder %s504_s27, %s499_s19 }
  0x1d   : > { %p502_p9 = pnand %p501_p8, %p500_p5 }
  0x1e   : > { %p507_p3 = por %p506_p2, %p505_p1 }
  0x1f   : > { %p503_p10 = pneg %p502_p9 }
  0x21   : > { %p508_p0 = pnand %p507_p3, %p503_p10 }
  0x23   : > { %511 = shalt.err (!%p508_p0)
}
  0x24   : > { %s600_s29 = smov 256   ;;  %s601_s3 = smov 16  }
  0x25   : > { %417 = dma.hbm_to_vmem [thread:$0]  (!%p693_p7), %s133_s8, 1024, %s135_s16, %s123_s17, %s600_s29, %s600_s29, %s601_s3  }
  0x26   : > { %146 = sbr.rel (%p677_p13) target bundleno = 574 (0x23e), region = 28  ;;  %s714_s5 = sand.u32 (!%p677_p13), 1, %s589_s10  }
  0x27   : > { %s392_s6 = sshll.u32 (!%p677_p13), %s714_s5, 6  ;;  %s149_s7 = scalar_lea.sflag (!%p677_p13), [#allocation3], %s714_s5 }
  0x28   : > { %s152_s14 = scalar_lea.vmem (!%p677_p13), [#allocation2], %s392_s6 }
  0x2b   : > { %572 = dma.done.wait (%p662_p6), %s149_s7, 1024  }
  0x2c   : > { %574 = vsyncadd (%p662_p6), %s149_s7, 4294966272 }
  0x2d   : > { %576 = dma.done.wait (%p40_p4), [#allocation6], 128  }
  0x2e   : > { %578 = vsyncadd (%p40_p4), [#allocation6], 4294967168  ;;  %v185_v0 = vld [vmem:[%s152_s14 + $0x30] sm:$0xff]  ;;  %v186_v1 = vld [vmem:[%s152_s14 + $0x38] sm:$0xff]  ;;  %vm188_vm0 = vcmask 261120   ;;  %s394_s20 = sshll.u32 %s714_s5, 3 }
  0x2f   : > { %v183_v2 = vld [vmem:[%s152_s14 + $0x20] sm:$0xff]  ;;  %204 = vmatpush.msra.mxu0 %v185_v0  ;;  %224 = vmatpush.msra.mxu1 %v186_v1  ;;  %v184_v3 = vld [vmem:[%s152_s14 + $0x28] sm:$0xff]  ;;  %v181_v4 = vld [vmem:[%s152_s14 + $0x10] sm:$0xff]  ;;  %s398_s23 = sshll.u32 %s638_s13, 3  ;;  %s178_s17 = scalar_lea.vmem [#allocation7], %s394_s20 }
  0x30   : > { %v182_v5 = vld [vmem:[%s152_s14 + $0x18] sm:$0xff]  ;;  %259 = vmatpush.xpose.msra.mxu2 %v185_v0  ;;  %279 = vmatpush.xpose.msra.mxu3 %v186_v1  ;;  %v179_v6 = vld [vmem:[%s152_s14] sm:$0xff]  ;;  %v180_v7 = vld [vmem:[%s152_s14 + $0x8] sm:$0xff]  ;;  %s299_s16 = scalar_lea.hbm %s765_s2, %s398_s23  ;;  %s301_s24 = sshll.u32 %s178_s17, 4  ;;  %s302_s24 = int_to_ptr.vmem [resolvable:$true] %s301_s24 }
  0x31   : > { %205 = vmatpush.msra.mxu0 %v183_v2  ;;  %225 = vmatpush.msra.mxu1 %v184_v3  ;;  %v187_v8 = vld [vmem:[#allocation5] sm:$0xff]  ;;  %s303_s19 = sshll.u32 %s299_s16, 4  ;;  %s289_s25 = scalar_lea.sflag [#allocation4], %s714_s5  ;;  %s304_s19 = int_to_ptr.hbm [resolvable:$true] %s303_s19 }
  0x32   : > { %s541_s26 = sshra.s32 %s304_s19, 4  ;;  %s547_s4 = scalar_lea.hbm %s765_s2, 16  ;;  %s542_s26 = int_to_ptr.hbm [resolvable:$true] %s541_s26 }
  0x33   : > { %206 = vmatpush.msra.mxu0 %v181_v4  ;;  %226 = vmatpush.msra.mxu1 %v182_v5  ;;  %s543_s27 = scalar_lea.hbm %s542_s26, 8  ;;  %p548_p0 = scmp.lt.s32.totalorder %s542_s26, %s765_s2 }
  0x34   : > { %260 = vmatpush.xpose.msra.mxu2 %v183_v2  ;;  %280 = vmatpush.xpose.msra.mxu3 %v184_v3  ;;  %p544_p4 = scmp.ne.s32.totalorder %s542_s26, %s543_s27  ;;  %p549_p7 = scmp.lt.s32.totalorder %s547_s4, %s543_s27 }
  0x35   : > { %207 = vmatpush.msra.mxu0 %v179_v6  ;;  %227 = vmatpush.msra.mxu1 %v180_v7 }
  0x36   : > { %395 = vmatmul.msk.f32.vlgmr.msra.gmra.mxu0 %vm188_vm0, %v187_v8  ;;  %396 = vmatmul.msk.f32.vlgmr.msra.gmra.mxu1 %vm188_vm0, %v187_v8  ;;  %p545_p6 = pnand %p544_p4, %p669_p11  ;;  %p550_p5 = por %p549_p7, %p548_p0 }
  0x38   : > { %261 = vmatpush.xpose.msra.mxu2 %v181_v4  ;;  %281 = vmatpush.xpose.msra.mxu3 %v182_v5  ;;  %p546_p13 = pneg %p545_p6 }
  0x3a   : > { %p551_p8 = pnand %p550_p5, %p546_p13 }
  0x3c   : > { %262 = vmatpush.xpose.msra.mxu2 %v179_v6  ;;  %282 = vmatpush.xpose.msra.mxu3 %v180_v7 }
  0xb3   : > { %v209_v9 = vpop.f32.mrf.mxu0  ;;  %v229_v10 = vpop.f32.mrf.mxu1 }
  0xb4   : > { %v232_v11 = vmax.f32 %v209_v9, %v229_v10 }
  0xb6   : > { %233 = vmax.xlane.f32.xlu0 %v232_v11 }
 0x129   : > { %v234_v12 = vpop.xlane.xlu0 %233 }
 0x12a   : > { %v235_v13 = vsub.f32 %v209_v9, %v234_v12  ;;  %v236_v14 = vsub.f32 %v229_v10, %v234_v12 }
 0x12c   : > { %v237_v15 = vmul.f32 1.442695, %v235_v13  ;;  %v239_v16 = vmul.f32 1.442695, %v236_v14 }
 0x12e   : > { %461 = vpow2.f32 %v237_v15 }
 0x12f   : > { %463 = vpow2.f32 %v239_v16 }
 0x134   : > { %v462_v17 = vpop.eup %461 }
 0x135   : > { %v464_v18 = vpop.eup %463 }
 0x136   : > { %v241_v19 = vadd.f32 %v464_v18, %v462_v17 }
 0x138   : > { %242 = vadd.xlane.f32.xlu0 %v241_v19 }
 0x1ab   : > { %v243_v20 = vpop.xlane.xlu0 %242 }
 0x1ac   : > { %465 = vrcp.f32 %v243_v20 }
 0x1b2   : > { %v466_v21 = vpop.eup %465 }
 0x1b3   : > { %v245_v22 = vmul.f32 %v466_v21, %v462_v17  ;;  %v246_v23 = vmul.f32 %v466_v21, %v464_v18 }
 0x1b5   : > { %263 = vmatmul.f32.vlgmr.msra.gmra.mxu2 %v245_v22  ;;  %283 = vmatmul.f32.vlgmr.msra.gmra.mxu3 %v246_v23 }
 0x238   : > { %v264_v24 = vpop.f32.mrf.mxu2  ;;  %v284_v25 = vpop.f32.mrf.mxu3 }
 0x239   : > { %v285_v26 = vadd.f32 %v284_v25, %v264_v24 }
 0x23b   : > { %287 = vst.msk [vmem:[%s178_s17] sm:$0xff] %vm188_vm0, %v285_v26 }
 0x23c   : > { %554 = shalt.err (!%p551_p8)
}
 0x23d   : > { %408 = dma.vmem_to_hbm [thread:$0]  (%p669_p11), %s302_s24, 128, %s304_s19, %s289_s25  }
 0x23e PF: > { %s315_s5 = sand.u32 1, %s585_s9   ;;  %p772_p9 = scmp.ge.s32.totalorder %s597_s12, 2 }
 0x23f   : > { %s316_s6 = scalar_lea.sflag [#allocation4], %s315_s5 }
 0x240   : > { %p419_p10 = pnand %p772_p9, %p673_p12 }
 0x242   : > { %p420_p1 = pneg %p419_p10 }
 0x244   : > { %580 = dma.done.wait (%p420_p1), %s316_s6, 128  }
 0x245   : > { %582 = vsyncadd (%p420_p1), %s316_s6, 4294967168  ;;  %p16_p2 = scmp.ge.s32.totalorder %s642_s15, 4   ;;  %s773_s9 = smov %s589_s10 }
 0x246   : > { %s774_s10 = smov %s593_s11  ;;  %s775_s11 = smov %s654_s18 }
 0x247   : > { %s776_s12 = smov %s642_s15  ;;  %18 = sbr.rel (!%p16_p2) target bundleno = 6 (0x6), region = 77 }
 0x24c   :  { %322 = vsyncpa [#allocation3], 1 }
 0x24d   :  { %324 = vsyncpa [#allocation3 + $0x1], 1 }
 0x24e   :  { %325 = vsyncpa [#allocation6], 1 }
 0x24f   :  { %326 = vsyncpa [#allocation4], 1 }
 0x250   :  { %328 = vsyncpa [#allocation4 + $0x1], 1 }

</bundles_post_ra>
